<compile_context>
chip_gen: v5e
topology: v5e:2x2
jax: 0.10.0
libtpu: 0.0.40
codegen_flags: <defaults>
</compile_context>

<pallas_src>
import functools

import jax
import jax.numpy as jnp
from jax import lax
from jax.experimental import pallas as pl
from jax.experimental.pallas import tpu as pltpu


def _round_up(a: int, b: int) -> int:
    return ((a + b - 1) // b) * b


def _sublane_multiple(dtype) -> int:
    # Sub-32-bit dtypes pack rows along sublanes: f32 -> 8, bf16 -> 16, int8/fp8 -> 32.
    itemsize = jnp.dtype(dtype).itemsize
    return max(8, 32 // max(1, itemsize))


def _norm_linear_kernel(x_ref, w_ref, b_ref, o_ref, acc_ref, ssq_ref, *, is_norm: bool):
    # x_ref: (tb, tk)   w_ref: (tk, tn)  [already (D, C) layout]   b_ref: (1, tn)
    # o_ref: (tb, tn)   acc_ref: (tb, tn) f32   ssq_ref: (tb, 1) f32
    k = pl.program_id(2)

    @pl.when(k == 0)
    def _init():
        acc_ref[...] = jnp.zeros_like(acc_ref)
        if is_norm:
            ssq_ref[...] = jnp.zeros_like(ssq_ref)

    x = x_ref[...]
    # Native-dtype operands, f32 MXU accumulation.
    acc_ref[...] += jnp.dot(x, w_ref[...], preferred_element_type=jnp.float32)

    if is_norm:
        # Partial row sum-of-squares for this K tile (zero-padded K columns add 0).
        xf = x.astype(jnp.float32)
        ssq_ref[...] += jnp.sum(xf * xf, axis=1, keepdims=True)

    @pl.when(k == pl.num_programs(2) - 1)
    def _finalize():
        y = acc_ref[...]
        if is_norm:
            # Row scale is mathematically identical to normalizing x first.
            # rsqrt goes to the EUP slot.  Bias is added AFTER the scale.
            # TODO(synk): PyTorch's normalize here has no eps; all-zero rows yield
            # inf/NaN in both implementations (zero-padded batch rows are sliced off).
            y = y * lax.rsqrt(ssq_ref[...])
        y = y + b_ref[...].astype(jnp.float32)
        o_ref[...] = y.astype(o_ref.dtype)


def norm_linear(x, weight, bias, *, is_norm=True,
                block_b=256, block_n=256, block_k=512,
                vmem_limit_bytes=48 * 1024 * 1024,
                buffer_depth=None, mxu_dtype=None):
    """Forward of NormLinear(model=nn.Linear(D, C), is_norm=is_norm).

    x:      (B, D)
    weight: (C, D)  -- PyTorch nn.Linear layout
    bias:   (C,)
    returns (B, C)

    mxu_dtype: optionally cast x / weight (e.g. to jnp.bfloat16) for MXU throughput;
               accumulation stays f32.  Default None keeps full input precision.
    """
    B, D = x.shape
    C, D2 = weight.shape
    assert D == D2, "weight in_features must match x feature dim"
    assert bias.shape == (C,)

    # Effective tile sizes, clamped to the (alignment-padded) problem size.
    sub = _sublane_multiple(x.dtype)
    tb = min(block_b, _round_up(B, sub))
    Bp = _round_up(B, tb)
    tn = min(block_n, _round_up(C, 128))
    Cp = _round_up(C, tn)
    # v7x megacore: if there is only one batch tile, try to give the parallel
    # out-feature axis >= 2 tiles so both TensorCores get work.
    if Bp // tb == 1 and Cp // tn == 1 and Cp >= 256:
        tn = _round_up(Cp // 2, 128)
        Cp = _round_up(C, tn)
    tk = min(block_k, _round_up(D, 128))
    Dp = _round_up(D, tk)

    # Pad operands so the grid tiles evenly (padding is zeros -> no effect on matmul
    # or sum-of-squares; padded rows/cols are sliced off the output).
    xp = x if (Bp == B and Dp == D) else jnp.pad(x, ((0, Bp - B), (0, Dp - D)))
    wT = weight.T                      # (D, C): MXU-native layout, no in-kernel transpose
    wTp = wT if (Dp == D and Cp == C) else jnp.pad(wT, ((0, Dp - D), (0, Cp - C)))
    bp = bias if Cp == C else jnp.pad(bias, (0, Cp - C))
    b2 = bp.reshape(1, Cp)

    if mxu_dtype is not None:
        xp = xp.astype(mxu_dtype)
        wTp = wTp.astype(mxu_dtype)

    kernel = functools.partial(_norm_linear_kernel, is_norm=is_norm)

    n_bi = Bp // tb
    n_cj = Cp // tn
    n_dk = Dp // tk
    x_bytes = int(jnp.dtype(xp.dtype).itemsize)
    w_bytes = int(jnp.dtype(wTp.dtype).itemsize)
    o_bytes = int(jnp.dtype(x.dtype).itemsize)
    cost = pl.CostEstimate(
        flops=2 * Bp * Dp * Cp,
        transcendentals=Bp * n_cj if is_norm else 0,
        bytes_accessed=(Bp * Dp * x_bytes * n_cj       # x re-streamed per out-feature tile
                        + Dp * Cp * w_bytes * n_bi     # weight re-streamed per batch tile
                        + Cp * o_bytes * n_bi
                        + Bp * Cp * o_bytes),
    )

    def _spec(shape, index_map):
        if buffer_depth is not None and buffer_depth != 2:
            return pl.BlockSpec(shape, index_map, pipeline_mode=pl.Buffered(buffer_depth))
        return pl.BlockSpec(shape, index_map)

    out = pl.pallas_call(
        kernel,
        out_shape=jax.ShapeDtypeStruct((Bp, Cp), x.dtype),
        grid_spec=pltpu.PrefetchScalarGridSpec(
            num_scalar_prefetch=0,
            grid=(n_bi, n_cj, n_dk),
            in_specs=[
                _spec((tb, tk), lambda i, j, k: (i, k)),   # x tile
                _spec((tk, tn), lambda i, j, k: (k, j)),   # weight tile, (D, C) layout
                pl.BlockSpec((1, tn), lambda i, j, k: (0, j)),   # bias tile
            ],
            out_specs=pl.BlockSpec((tb, tn), lambda i, j, k: (i, j)),
            scratch_shapes=[
                pltpu.VMEM((tb, tn), jnp.float32),   # matmul accumulator
                pltpu.VMEM((tb, 1), jnp.float32),    # row sum-of-squares accumulator
            ],
        ),
        compiler_params=pltpu.CompilerParams(
            dimension_semantics=("parallel", "parallel", "arbitrary"),
            vmem_limit_bytes=vmem_limit_bytes,
        ),
        cost_estimate=cost,
    )(xp, wTp, b2)

    if Bp != B or Cp != C:
        out = out[:B, :C]
    return out


def _reference(x, weight, bias, is_norm):
    xf = x.astype(jnp.float32)
    if is_norm:
        norm = jnp.sqrt(jnp.sum(xf * xf, axis=1, keepdims=True))
        xf = xf / norm
    wf = weight.astype(jnp.float32)
    bf = bias.astype(jnp.float32)
    return (xf @ wf.T + bf).astype(x.dtype)


if __name__ == "__main__":
    key = jax.random.PRNGKey(0)
    B, D, C = 8, 32, 16   # batch, in_features, out_features

    kx, kw, kb = jax.random.split(key, 3)
    x = jax.random.normal(kx, (B, D), dtype=jnp.float32)
    weight = jax.random.normal(kw, (C, D), dtype=jnp.float32) * 0.1   # nn.Linear weight (C, D)
    bias = jax.random.normal(kb, (C,), dtype=jnp.float32) * 0.1       # nn.Linear bias (C,)

    # is_norm=True path
    out = jax.block_until_ready(norm_linear(x, weight, bias, is_norm=True))
    ref = _reference(x, weight, bias, is_norm=True)
    assert out.shape == (B, C)
    assert jnp.allclose(out, ref, atol=1e-5, rtol=1e-5), "mismatch vs reference (norm)"

    # is_norm=False path (plain linear)
    out2 = jax.block_until_ready(norm_linear(x, weight, bias, is_norm=False))
    ref2 = _reference(x, weight, bias, is_norm=False)
    assert jnp.allclose(out2, ref2, atol=1e-5, rtol=1e-5), "mismatch vs reference (no norm)"

    # Non-multiple batch (exercises the zero-padding path; padded rows sliced off)
    x3 = jax.random.normal(jax.random.PRNGKey(1), (10, D), dtype=jnp.float32)
    out3 = jax.block_until_ready(norm_linear(x3, weight, bias, is_norm=True))
    ref3 = _reference(x3, weight, bias, is_norm=True)
    assert out3.shape == (10, C)
    assert jnp.allclose(out3, ref3, atol=1e-5, rtol=1e-5), "mismatch vs reference (padded batch)"

    # Feature dim larger than one K tile (exercises the K-reduction grid axis + accumulators)
    D4, C4 = 1536, 200
    k4x, k4w, k4b = jax.random.split(jax.random.PRNGKey(2), 3)
    x4 = jax.random.normal(k4x, (12, D4), dtype=jnp.float32)
    w4 = jax.random.normal(k4w, (C4, D4), dtype=jnp.float32) * 0.02
    b4 = jax.random.normal(k4b, (C4,), dtype=jnp.float32) * 0.1
    out4 = jax.block_until_ready(norm_linear(x4, w4, b4, is_norm=True, block_k=512))
    ref4 = _reference(x4, w4, b4, is_norm=True)
    assert out4.shape == (12, C4)
    assert jnp.allclose(out4, ref4, atol=1e-4, rtol=1e-4), "mismatch vs reference (K-tiled)"

    print("KERNEL_OK")
</pallas_src>

<mosaic_0001>
module attributes {stable_mosaic.version = 11 : i64} {
  func.func @_norm_linear_kernel(%arg0: i32, %arg1: i32, %arg2: i32, %arg3: memref<8x128xf32, #tpu.memory_space<vmem>>, %arg4: memref<128x128xf32, #tpu.memory_space<vmem>>, %arg5: memref<1x128xf32, #tpu.memory_space<vmem>>, %arg6: memref<8x128xf32, #tpu.memory_space<vmem>>, %arg7: memref<8x128xf32, #tpu.memory_space<vmem>>, %arg8: memref<8x1xf32, #tpu.memory_space<vmem>>) attributes {dimension_semantics = [#tpu.dimension_semantics<parallel>, #tpu.dimension_semantics<parallel>, #tpu.dimension_semantics<arbitrary>], iteration_bounds = array<i64: 1, 1, 1>, scalar_prefetch = 0 : i64, scratch_operands = 2 : i64, tpu.core_type = #tpu.core_type<tc>, window_params = [{transform_indices = @transform_0, window_bounds = array<i64: 8, 128>}, {transform_indices = @transform_1, window_bounds = array<i64: 128, 128>}, {transform_indices = @transform_2, window_bounds = array<i64: 1, 128>}, {transform_indices = @transform_3, window_bounds = array<i64: 8, 128>}]} {
    %c0_i32 = arith.constant 0 : i32
    %0 = arith.cmpi eq, %arg2, %c0_i32 : i32
    %1 = arith.extui %0 : i1 to i32
    %c0_i32_0 = arith.constant 0 : i32
    %2 = arith.cmpi ne, %1, %c0_i32_0 : i32
    scf.if %2 {
      %cst_15 = arith.constant 0.000000e+00 : f32
      %18 = vector.broadcast %cst_15 : f32 to vector<8x128xf32>
      %c0_16 = arith.constant 0 : index
      %c0_17 = arith.constant 0 : index
      %19 = vector.load %arg7[%c0_16, %c0_17] : memref<8x128xf32, #tpu.memory_space<vmem>>, vector<8x128xf32>
      tpu.vector_store %arg7[%c0_16, %c0_17], %18 {strides = array<i32>} : memref<8x128xf32, #tpu.memory_space<vmem>>, vector<8x128xf32>,
      %cst_18 = arith.constant 0.000000e+00 : f32
      %20 = vector.broadcast %cst_18 : f32 to vector<8x1xf32>
      %c0_19 = arith.constant 0 : index
      %c0_20 = arith.constant 0 : index
      %21 = vector.load %arg8[%c0_19, %c0_20] : memref<8x1xf32, #tpu.memory_space<vmem>>, vector<8x1xf32>
      tpu.vector_store %arg8[%c0_19, %c0_20], %20 {strides = array<i32>} : memref<8x1xf32, #tpu.memory_space<vmem>>, vector<8x1xf32>,
    } else {
    }
    %c0 = arith.constant 0 : index
    %c0_1 = arith.constant 0 : index
    %3 = vector.load %arg3[%c0, %c0_1] : memref<8x128xf32, #tpu.memory_space<vmem>>, vector<8x128xf32>
    %c0_2 = arith.constant 0 : index
    %c0_3 = arith.constant 0 : index
    %4 = vector.load %arg7[%c0_2, %c0_3] : memref<8x128xf32, #tpu.memory_space<vmem>>, vector<8x128xf32>
    %c0_4 = arith.constant 0 : index
    %c0_5 = arith.constant 0 : index
    %5 = vector.load %arg4[%c0_4, %c0_5] : memref<128x128xf32, #tpu.memory_space<vmem>>, vector<128x128xf32>
    %cst = arith.constant dense<0.000000e+00> : vector<8x128xf32>
    %6 = tpu.matmul %3, %5, %cst {dimension_numbers = #tpu.dot_dimension_numbers<[1], [0], [0], [1], [0, 0, 1, 1], [], []>} : vector<8x128xf32>, vector<128x128xf32>, vector<8x128xf32> -> vector<8x128xf32>
    %7 = arith.addf %4, %6 : vector<8x128xf32>
    %c0_6 = arith.constant 0 : index
    %c0_7 = arith.constant 0 : index
    %8 = vector.load %arg7[%c0_6, %c0_7] : memref<8x128xf32, #tpu.memory_space<vmem>>, vector<8x128xf32>
    tpu.vector_store %arg7[%c0_6, %c0_7], %7 {strides = array<i32>} : memref<8x128xf32, #tpu.memory_space<vmem>>, vector<8x128xf32>,
    %c0_8 = arith.constant 0 : index
    %c0_9 = arith.constant 0 : index
    %9 = vector.load %arg8[%c0_8, %c0_9] : memref<8x1xf32, #tpu.memory_space<vmem>>, vector<8x1xf32>
    %10 = arith.mulf %3, %3 : vector<8x128xf32>
    %cst_10 = arith.constant dense<0.000000e+00> : vector<8xf32>
    %11 = vector.multi_reduction <add>, %10, %cst_10 [1] : vector<8x128xf32> to vector<8xf32>
    %12 = vector.shape_cast %11 : vector<8xf32> to vector<8x1xf32>
    %13 = arith.addf %9, %12 : vector<8x1xf32>
    %c0_11 = arith.constant 0 : index
    %c0_12 = arith.constant 0 : index
    %14 = vector.load %arg8[%c0_11, %c0_12] : memref<8x1xf32, #tpu.memory_space<vmem>>, vector<8x1xf32>
    tpu.vector_store %arg8[%c0_11, %c0_12], %13 {strides = array<i32>} : memref<8x1xf32, #tpu.memory_space<vmem>>, vector<8x1xf32>,
    %c0_i32_13 = arith.constant 0 : i32
    %15 = arith.cmpi eq, %arg2, %c0_i32_13 : i32
    %16 = arith.extui %15 : i1 to i32
    %c0_i32_14 = arith.constant 0 : i32
    %17 = arith.cmpi ne, %16, %c0_i32_14 : i32
    scf.if %17 {
      %c0_15 = arith.constant 0 : index
      %c0_16 = arith.constant 0 : index
      %18 = vector.load %arg7[%c0_15, %c0_16] : memref<8x128xf32, #tpu.memory_space<vmem>>, vector<8x128xf32>
      %c0_17 = arith.constant 0 : index
      %c0_18 = arith.constant 0 : index
      %19 = vector.load %arg8[%c0_17, %c0_18] : memref<8x1xf32, #tpu.memory_space<vmem>>, vector<8x1xf32>
      %20 = math.rsqrt %19 : vector<8x1xf32>
      %21 = vector.broadcast %20 : vector<8x1xf32> to vector<8x128xf32>
      %22 = arith.mulf %18, %21 : vector<8x128xf32>
      %c0_19 = arith.constant 0 : index
      %c0_20 = arith.constant 0 : index
      %23 = vector.load %arg5[%c0_19, %c0_20] : memref<1x128xf32, #tpu.memory_space<vmem>>, vector<1x128xf32>
      %24 = vector.broadcast %23 : vector<1x128xf32> to vector<8x128xf32>
      %25 = arith.addf %22, %24 : vector<8x128xf32>
      %c0_21 = arith.constant 0 : index
      %c0_22 = arith.constant 0 : index
      %26 = vector.load %arg6[%c0_21, %c0_22] : memref<8x128xf32, #tpu.memory_space<vmem>>, vector<8x128xf32>
      tpu.vector_store %arg6[%c0_21, %c0_22], %25 {strides = array<i32>} : memref<8x128xf32, #tpu.memory_space<vmem>>, vector<8x128xf32>,
    } else {
    }
    return
  }
  func.func @transform_0(%arg0: i32, %arg1: i32, %arg2: i32) -> (i32, i32) {
    %c0_i32 = arith.constant 0 : i32
    return %arg0, %arg2 : i32, i32
  }
  func.func @transform_1(%arg0: i32, %arg1: i32, %arg2: i32) -> (i32, i32) {
    %c0_i32 = arith.constant 0 : i32
    return %arg2, %arg1 : i32, i32
  }
  func.func @transform_2(%arg0: i32, %arg1: i32, %arg2: i32) -> (i32, i32) {
    %c0_i32 = arith.constant 0 : i32
    %c0_i32_0 = arith.constant 0 : i32
    return %c0_i32, %arg1 : i32, i32
  }
  func.func @transform_3(%arg0: i32, %arg1: i32, %arg2: i32) -> (i32, i32) {
    %c0_i32 = arith.constant 0 : i32
    return %arg0, %arg1 : i32, i32
  }
}

</mosaic_0001>

<bundles_post_ra>
// kernel: tpu_custom_call.1
= control target key start
LH: loop header
LB: loop body
LE: loop exit
PB: predicated region body
PF: predicated region fallthrough
CT: control target
= control target key end

     0   :  { %8 = vsyncpa [#allocation5], 0  ;;  %s274_s0 = inlined_call_operand.hbm [shape: f32[8,128], index: 0, kind: input, shape index: {}]   ;;  %s275_s1 = inlined_call_operand.hbm [shape: f32[128,128], index: 1, kind: input, shape index: {}]   ;;  %s276_s2 = inlined_call_operand.vmem [shape: f32[1,128], index: 2, kind: input, shape index: {}]   ;;  %s277_s3 = inlined_call_operand.hbm [shape: f32[8,128], index: 3, kind: output, shape index: {}]  }
   0x1   :  { %9 = vsyncpa [#allocation8], 0 }
   0x2   :  { %10 = vsyncpa [#allocation6], 0  ;;  %s16_s14 = sshll.u32 %s274_s0, 4  ;;  %s233_s15 = smov [#allocation4]   ;;  %s17_s14 = int_to_ptr.hbm [resolvable:$true] %s16_s14 }
   0x3   :  { %s18_s16 = sshll.u32 %s233_s15, 4  ;;  %s26_s19 = sshll.u32 %s275_s1, 4  ;;  %s19_s16 = int_to_ptr.vmem [resolvable:$true] %s18_s16  ;;  %s27_s19 = int_to_ptr.hbm [resolvable:$true] %s26_s19 }
   0x4   :  { %21 = dma.hbm_to_vmem [thread:$0]  %s17_s14, 128, %s19_s16, [#allocation5]  }
   0x5   :  { %s234_s20 = smov [#allocation7]   ;;  %s235_s22 = smov 128  }
   0x6   :  { %s28_s21 = sshll.u32 %s234_s20, 4  ;;  %s236_s23 = smov 8   ;;  %s29_s21 = int_to_ptr.vmem [resolvable:$true] %s28_s21 }
   0x7   :  { %34 = dma.hbm_to_vmem [thread:$0]  %s27_s19, 2048, %s29_s21, [#allocation8], %s235_s22, %s235_s22, %s236_s23  }
   0x8   :  { %227 = dma.done.wait [#allocation5], 128  }
   0x9   :  { %228 = vsyncadd [#allocation5], 4294967168 }
   0xa   :  { %229 = dma.done.wait [#allocation8], 2048  }
   0xb   :  { %230 = vsyncadd [#allocation8], 4294965248  ;;  %vm50_vm0 = vcmask 7168   ;;  %v237_v0 = vmov 0.0   ;;  %v52_v1 = vld [vmem:[#allocation4] sm:$0xff]  ;;  %v68_v3 = vld [vmem:[#allocation7 + $0x70] sm:$0xff] }
   0xc   :  { %51 = vst.msk [vmem:[#allocation3] sm:$0xff] %vm50_vm0, %v237_v0  ;;  %v69_v2 = vld [vmem:[#allocation7 + $0x78] sm:$0xff]  ;;  %v93_v4 = vmul.f32 %v52_v1, %v52_v1  ;;  %v67_v5 = vld [vmem:[#allocation7 + $0x68] sm:$0xff]  ;;  %v66_v6 = vld [vmem:[#allocation7 + $0x60] sm:$0xff]  ;;  %v238_v14 = vmov 0   ;;  %s239_s24 = smov [#allocation9]  }
   0xd   :  { %70 = vmatpush.msra.mxu0 %v69_v2  ;;  %v65_v7 = vld [vmem:[#allocation7 + $0x58] sm:$0xff]  ;;  %v64_v8 = vld [vmem:[#allocation7 + $0x50] sm:$0xff]  ;;  %v63_v9 = vld [vmem:[#allocation7 + $0x48] sm:$0xff]  ;;  %151 = vset.pattern.permute.xlu0 %v238_v14  ;;  %s131_s25 = sshll.u32 %s239_s24, 4  ;;  %s133_s28 = sshll.u32 %s277_s3, 4  ;;  %s132_s25 = int_to_ptr.vmem [resolvable:$true] %s131_s25  ;;  %s134_s28 = int_to_ptr.hbm [resolvable:$true] %s133_s28 }
   0xe   :  { %94 = vadd.xlane.f32.xlu0 %v93_v4  ;;  %v62_v10 = vld [vmem:[#allocation7 + $0x40] sm:$0xff]  ;;  %v61_v11 = vld [vmem:[#allocation7 + $0x38] sm:$0xff]  ;;  %v60_v12 = vld [vmem:[#allocation7 + $0x30] sm:$0xff] }
   0xf   :  { %71 = vmatpush.msra.mxu0 %v68_v3  ;;  %v59_v13 = vld [vmem:[#allocation7 + $0x28] sm:$0xff]  ;;  %v58_v15 = vld [vmem:[#allocation7 + $0x20] sm:$0xff]  ;;  %v57_v16 = vld [vmem:[#allocation7 + $0x18] sm:$0xff] }
  0x10   :  { %v56_v17 = vld [vmem:[#allocation7 + $0x10] sm:$0xff]  ;;  %v55_v18 = vld [vmem:[#allocation7 + $0x8] sm:$0xff]  ;;  %v54_v19 = vld [vmem:[#allocation7] sm:$0xff] }
  0x11   :  { %72 = vmatpush.msra.mxu0 %v67_v5  ;;  %v152_v32 = vld [vmem:[%s276_s2] ss:$0 sm:$0xff] }
  0x13   :  { %73 = vmatpush.msra.mxu0 %v66_v6  ;;  %v92_v20 = vld [vmem:[#allocation3] sm:$0xff] }
  0x15   :  { %74 = vmatpush.msra.mxu0 %v65_v7 }
  0x17   :  { %75 = vmatpush.msra.mxu0 %v64_v8 }
  0x19   :  { %76 = vmatpush.msra.mxu0 %v63_v9 }
  0x1b   :  { %77 = vmatpush.msra.mxu0 %v62_v10 }
  0x1d   :  { %78 = vmatpush.msra.mxu0 %v61_v11 }
  0x1f   :  { %79 = vmatpush.msra.mxu0 %v60_v12 }
  0x21   :  { %80 = vmatpush.msra.mxu0 %v59_v13 }
  0x23   :  { %81 = vmatpush.msra.mxu0 %v58_v15 }
  0x25   :  { %82 = vmatpush.msra.mxu0 %v57_v16 }
  0x27   :  { %83 = vmatpush.msra.mxu0 %v56_v17 }
  0x29   :  { %84 = vmatpush.msra.mxu0 %v55_v18 }
  0x2b   :  { %85 = vmatpush.msra.mxu0 %v54_v19 }
  0x2c   :  { %86 = vmatmul.f32.vlgmr.msra.gmra.mxu0 %v52_v1 }
  0x81   :  { %v95_v21 = vpop.xlane.xlu0 %94 }
  0x82   :  { %v96_v22 = vadd.f32 %v95_v21, %v92_v20 }
  0x84   :  { %98 = vst.msk [vmem:[#allocation3] sm:$0xff] %vm50_vm0, %v96_v22 }
  0x8b   :  { %v103_v23 = vld [vmem:[#allocation3] sm:$0xff] }
  0x8c   :  { %153 = vrsqrt.f32 %v103_v23  ;;  %vm110_vm2 = vweird.f32 %v103_v23 }
  0x92   :  { %v154_v24 = vpop.eup %153 }
  0x93   :  { %v105_v25 = vmul.f32 %v154_v24, %v103_v23  ;;  %vm111_vm1 = vweird.f32 %v154_v24 }
  0x94   :  { %vm112_vm3 = vmor %vm110_vm2, %vm111_vm1 }
  0x95   :  { %v106_v26 = vmul.f32 %v154_v24, %v105_v25 }
  0x97   :  { %v107_v27 = vmul.f32 0.5, %v106_v26 }
  0x99   :  { %v108_v28 = vsub.f32 1.5, %v107_v27 }
  0x9b   :  { %v109_v29 = vmul.f32 %v154_v24, %v108_v28 }
  0x9d   :  { %v113_v30 = vsel %vm112_vm3, %v154_v24, %v109_v29 }
  0x9e   :  { %116 = vperm.xlu0 %151, %v113_v30  }
  0xa9   :  { %v87_v31 = vpop.f32.mrf.mxu0 }
 0x110   :  { %v117_v33 = vpop.permute.xlu0 %116 }
 0x111   :  { %v119_v34 = vmul.f32 %v117_v33, %v87_v31 }
 0x113   :  { %v124_v35 = vadd.f32 %v152_v32, %v119_v34 }
 0x115   :  { %125 = vst [vmem:[#allocation9] sm:$0xff] %v124_v35 }
 0x116   :  { %136 = dma.vmem_to_hbm [thread:$0]  %s132_s25, 128, %s134_s28, [#allocation6]  }
 0x117   :  { %231 = dma.done.wait [#allocation6], 128  }
 0x118   :  { %232 = vsyncadd [#allocation6], 4294967168 }
 0x119   :  { %141 = vsyncpa [#allocation5], 1 }
 0x11a   :  { %142 = vsyncpa [#allocation8], 1 }
 0x11b   :  { %143 = vsyncpa [#allocation6], 1 }

</bundles_post_ra>
